<compile_context>
chip_gen: v7x
topology: tpu7x:2x2x1
jax: 0.10.0
libtpu: 0.0.40
codegen_flags: <defaults>
</compile_context>

<pallas_src>
import functools

import jax
import jax.numpy as jnp
from jax.experimental import pallas as pl
from jax.experimental.pallas import tpu as pltpu

LANES = 128          # vreg lane width
MAX_TILE_ROWS = 512  # row-tile for large rollouts (sublane dimension)


def _sample_kernel(theta_ref, bits_ref, action_ref, *, num_actions):
    """Uniform multinomial sampler: action = floor(u * A), u ~ U[0, 1)."""
    # zeros = theta * 0 : keep the dependence on the parameter (sums to 0.0).
    zero = jnp.sum(theta_ref[...] * 0.0)

    bits = bits_ref[...]                                   # uint32 (tile, 128)
    # 24-bit uniform in [0, 1): exact in float32, unbiased for A | 2**24.
    u = (bits >> 8).astype(jnp.float32) * jnp.float32(1.0 / (1 << 24))
    idx = jnp.floor((u + zero) * jnp.float32(num_actions)).astype(jnp.int32)
    action_ref[...] = jnp.minimum(idx, num_actions - 1)    # safety clamp


def random_net_forward(inputs, theta, core_state=(), *, rng_key=None):
    """Pallas implementation of RandomNet.forward."""
    glyphs = inputs["glyphs"]
    T, B = glyphs.shape[0], glyphs.shape[1]
    TB = T * B
    A = int(theta.shape[0])

    # ---- constant outputs (theta * 0 broadcast), produced outside the kernel.
    zeros_row = (theta * 0.0).astype(jnp.float32)                     # (A,)
    policy_logits = jnp.broadcast_to(zeros_row[None, None, :], (T, B, A))
    baseline = jnp.sum(policy_logits, axis=2)                         # (T, B)

    # ---- Pallas sampler: lane-dense (rows_pad, 128) slab over TB elements.
    if rng_key is None:
        rng_key = jax.random.PRNGKey(0)

    rows = max(-(-TB // LANES), 1)
    if rows <= MAX_TILE_ROWS:
        rows_pad = -(-rows // 8) * 8          # pad sublanes to a multiple of 8
        tile_rows = rows_pad
    else:
        rows_pad = -(-rows // MAX_TILE_ROWS) * MAX_TILE_ROWS
        tile_rows = MAX_TILE_ROWS
    grid = rows_pad // tile_rows

    bits = jax.random.bits(rng_key, (rows_pad, LANES), dtype=jnp.uint32)
    theta2d = theta.reshape(1, A).astype(jnp.float32)

    action_slab = pl.pallas_call(
        functools.partial(_sample_kernel, num_actions=A),
        out_shape=jax.ShapeDtypeStruct((rows_pad, LANES), jnp.int32),
        grid=(grid,),
        in_specs=[
            pl.BlockSpec((1, A), lambda i: (0, 0)),               # theta row
            pl.BlockSpec((tile_rows, LANES), lambda i: (i, 0)),   # random bits
        ],
        out_specs=pl.BlockSpec((tile_rows, LANES), lambda i: (i, 0)),
        compiler_params=pltpu.CompilerParams(
            dimension_semantics=("parallel",)),
    )(theta2d, bits)

    # torch.multinomial returns int64; int32 kept here (values identical).
    action = action_slab.reshape(-1)[:TB].reshape(T, B)

    out = dict(
        policy_logits=policy_logits,
        baseline=baseline,
        action=action,
        chosen_option=policy_logits,
        teacher_logits=policy_logits,
        pot_sm=policy_logits,
    )
    return out, core_state


if __name__ == "__main__":
    key = jax.random.PRNGKey(0)
    k1, k2, k3 = jax.random.split(key, 3)

    # Small shapes consistent with the module: glyphs (T, B, H, W), blstats (T, B, F)
    T, B, H, W, F_BLSTATS = 4, 2, 8, 8, 8
    NUM_ACTIONS = 16

    glyphs = jax.random.randint(k1, (T, B, H, W), 0, 5000, dtype=jnp.int32)
    blstats = jax.random.normal(k2, (T, B, F_BLSTATS), dtype=jnp.float32)
    inputs = {"glyphs": glyphs, "blstats": blstats}

    # theta is initialized to zeros in RandomNet.__init__
    theta = jnp.zeros((NUM_ACTIONS,), dtype=jnp.float32)

    out, core_state = random_net_forward(inputs, theta, core_state=(), rng_key=k3)
    jax.block_until_ready(out)

    assert out["policy_logits"].shape == (T, B, NUM_ACTIONS)
    assert out["baseline"].shape == (T, B)
    assert out["action"].shape == (T, B)
    assert bool(jnp.all(out["policy_logits"] == 0.0))
    assert bool(jnp.all(out["baseline"] == 0.0))
    assert bool(jnp.all((out["action"] >= 0) & (out["action"] < NUM_ACTIONS)))

    print("KERNEL_OK")
</pallas_src>

<mosaic_0001>
module attributes {stable_mosaic.version = 11 : i64} {
  func.func @_sample_kernel(%arg0: i32, %arg1: memref<1x16xf32, #tpu.memory_space<vmem>>, %arg2: memref<8x128xi32, #tpu.memory_space<vmem>>, %arg3: memref<8x128xi32, #tpu.memory_space<vmem>>) attributes {dimension_semantics = [#tpu.dimension_semantics<parallel>], iteration_bounds = array<i64: 1>, scalar_prefetch = 0 : i64, scratch_operands = 0 : i64, tpu.core_type = #tpu.core_type<tc>, window_params = [{pipeline_mode = #tpu.pipeline_mode<synchronous>, transform_indices = @transform_0, window_bounds = array<i64: 1, 16>}, {transform_indices = @transform_1, window_bounds = array<i64: 8, 128>}, {transform_indices = @transform_2, window_bounds = array<i64: 8, 128>}]} {
    %c0 = arith.constant 0 : index
    %c0_0 = arith.constant 0 : index
    %0 = vector.load %arg1[%c0, %c0_0] : memref<1x16xf32, #tpu.memory_space<vmem>>, vector<1x16xf32>
    %cst = arith.constant 0.000000e+00 : f32
    %1 = vector.broadcast %cst : f32 to vector<1x16xf32>
    %2 = arith.mulf %0, %1 : vector<1x16xf32>
    %3 = vector.shape_cast %2 : vector<1x16xf32> to vector<1x1x16xf32>
    %cst_1 = arith.constant dense<0.000000e+00> : vector<1xf32>
    %4 = vector.multi_reduction <add>, %3, %cst_1 [1, 2] : vector<1x1x16xf32> to vector<1xf32>
    %5 = vector.shape_cast %4 : vector<1xf32> to vector<1x1x1xf32>
    %6 = vector.extract %5[0, 0, 0] : f32 from vector<1x1x1xf32>
    %c0_2 = arith.constant 0 : index
    %c0_3 = arith.constant 0 : index
    %7 = vector.load %arg2[%c0_2, %c0_3] : memref<8x128xi32, #tpu.memory_space<vmem>>, vector<8x128xi32>
    %c8_i32 = arith.constant 8 : i32
    %8 = vector.broadcast %c8_i32 : i32 to vector<8x128xi32>
    %9 = arith.shrui %7, %8 : vector<8x128xi32>
    %10 = arith.uitofp %9 : vector<8x128xi32> to vector<8x128xf32>
    %cst_4 = arith.constant 5.96046448E-8 : f32
    %11 = vector.broadcast %cst_4 : f32 to vector<8x128xf32>
    %12 = arith.mulf %10, %11 : vector<8x128xf32>
    %13 = vector.broadcast %6 : f32 to vector<8x128xf32>
    %14 = arith.addf %12, %13 : vector<8x128xf32>
    %cst_5 = arith.constant 1.600000e+01 : f32
    %15 = vector.broadcast %cst_5 : f32 to vector<8x128xf32>
    %16 = arith.mulf %14, %15 : vector<8x128xf32>
    %17 = math.floor %16 : vector<8x128xf32>
    %18 = arith.fptosi %17 : vector<8x128xf32> to vector<8x128xi32>
    %c15_i32 = arith.constant 15 : i32
    %19 = vector.broadcast %c15_i32 : i32 to vector<8x128xi32>
    %20 = arith.minsi %18, %19 : vector<8x128xi32>
    %c0_6 = arith.constant 0 : index
    %c0_7 = arith.constant 0 : index
    %21 = vector.load %arg3[%c0_6, %c0_7] : memref<8x128xi32, #tpu.memory_space<vmem>>, vector<8x128xi32>
    tpu.vector_store %arg3[%c0_6, %c0_7], %20 {strides = array<i32>} : memref<8x128xi32, #tpu.memory_space<vmem>>, vector<8x128xi32>,
    return
  }
  func.func @transform_0(%arg0: i32) -> (i32, i32) {
    %c0_i32 = arith.constant 0 : i32
    %c0_i32_0 = arith.constant 0 : i32
    %c0_i32_1 = arith.constant 0 : i32
    return %c0_i32, %c0_i32_0 : i32, i32
  }
  func.func @transform_1(%arg0: i32) -> (i32, i32) {
    %c0_i32 = arith.constant 0 : i32
    %c0_i32_0 = arith.constant 0 : i32
    return %arg0, %c0_i32 : i32, i32
  }
  func.func @transform_2(%arg0: i32) -> (i32, i32) {
    %c0_i32 = arith.constant 0 : i32
    %c0_i32_0 = arith.constant 0 : i32
    return %arg0, %c0_i32 : i32, i32
  }
}

</mosaic_0001>

<bundles_post_ra>
// kernel: tpu_custom_call.1
= control target key start
LH: loop header
LB: loop body
LE: loop exit
PB: predicated region body
PF: predicated region fallthrough
CT: control target
= control target key end

     0   :  { %7 = vsyncpa [#allocation3], 0  ;;  %s215_s0 = inlined_call_operand.hbm [shape: f32[1,16], index: 0, kind: input, shape index: {}]   ;;  %s216_s1 = inlined_call_operand.hbm [shape: u32[8,128], index: 1, kind: input, shape index: {}]   ;;  %s217_s2 = inlined_call_operand.hbm [shape: s32[8,128], index: 2, kind: output, shape index: {}]  }
   0x1   :  { %8 = vsyncpa [#allocation6], 0 }
   0x2   :  { %9 = vsyncpa [#allocation4], 0  ;;  %s161_s9 = smov [#allocation2]   ;;  %s162_s11 = smov [#allocation5]  }
   0x3   :  { %s16_s10 = sshll.u32 %s161_s9, 4  ;;  %s26_s12 = sshll.u32 %s162_s11, 4  ;;  %s17_s10 = int_to_ptr.vmem [resolvable:$true] %s16_s10  ;;  %s27_s12 = int_to_ptr.vmem [resolvable:$true] %s26_s12 }
   0x4   :  { %s89_s15 = scalar_lea.hbm %s215_s0, 16 }
   0x5   :  { %p90_p0 = scmp.ne.s32.totalorder %s215_s0, %s89_s15  ;;  %p93_p1 = scmp.lt.u32.totalorder %s89_s15, %s215_s0 }
   0x7   :  { %p95_p2 = pnand %p93_p1, %p90_p0 }
   0x9   :  { %98 = shalt.err (!%p95_p2)
}
   0xa   :  { %s99_s20 = scalar_lea.vmem %s17_s10, 16  ;;  %s103_s21 = scalar_lea.vmem %s17_s10, 32 }
   0xb   :  { %p100_p3 = scmp.ne.s32.totalorder %s17_s10, %s99_s20  ;;  %p104_p4 = scmp.lt.s32.totalorder %s17_s10, %s17_s10 }
   0xc   :  { %p105_p5 = scmp.lt.s32.totalorder %s103_s21, %s99_s20 }
   0xe   :  { %p106_p6 = por %p105_p5, %p104_p4 }
  0x10   :  { %p107_p7 = pnand %p106_p6, %p100_p3 }
  0x12   :  { %110 = shalt.err (!%p107_p7)
}
  0x13   :  { %19 = dma.hbm_to_vmem [thread:$0]  %s215_s0, 16, %s17_s10, [#allocation3]  }
  0x14   :  { %s111_s26 = scalar_lea.hbm %s216_s1, 128 }
  0x15   :  { %p112_p8 = scmp.ne.s32.totalorder %s216_s1, %s111_s26  ;;  %p115_p9 = scmp.lt.u32.totalorder %s111_s26, %s216_s1 }
  0x17   :  { %p117_p10 = pnand %p115_p9, %p112_p8 }
  0x19   :  { %120 = shalt.err (!%p117_p10)
}
  0x1a   :  { %s121_s3 = scalar_lea.vmem %s27_s12, 128  ;;  %p126_p12 = scmp.lt.s32.totalorder %s27_s12, %s27_s12 }
  0x1b   :  { %p122_p11 = scmp.ne.s32.totalorder %s27_s12, %s121_s3  ;;  %p127_p13 = scmp.lt.s32.totalorder %s121_s3, %s121_s3 }
  0x1d   :  { %p128_p0 = por %p127_p13, %p126_p12 }
  0x1f   :  { %p129_p1 = pnand %p128_p0, %p122_p11 }
  0x21   :  { %132 = shalt.err (!%p129_p1)
}
  0x22   :  { %29 = dma.hbm_to_vmem [thread:$0]  %s216_s1, 128, %s27_s12, [#allocation6]  }
  0x23   :  { %155 = dma.done.wait [#allocation3], 16  }
  0x24   :  { %156 = vsyncadd [#allocation3], 4294967280 }
  0x25   :  { %157 = dma.done.wait [#allocation6], 128  }
  0x26   :  { %158 = vsyncadd [#allocation6], 4294967168  ;;  %v36_v0 = vld [vmem:[#allocation2] sm:$0x1]  ;;  %vm38_vm0 = vcmask 122880   ;;  %v49_v10 = vld [vmem:[#allocation5] sm:$0xff] }
  0x27   :  { %v37_v1 = vmul.f32 0.0, %v36_v0  ;;  %v50_v11 = vshrl.u32 %v49_v10, 8  ;;  %s163_s5 = smov [#allocation7]  }
  0x28   :  { %s72_s6 = sshll.u32 %s163_s5, 4  ;;  %s73_s6 = int_to_ptr.vmem [resolvable:$true] %s72_s6 }
  0x29   :  { %v39_v2 = vsel %vm38_vm0, %v37_v1, 0.0  ;;  %v51_v12 = vshrl.u32 %v50_v11, 16  ;;  %v52_v13 = vand.u32 65535, %v50_v11  ;;  %s133_s7 = scalar_lea.vmem %s73_s6, 128  ;;  %p138_p3 = scmp.lt.s32.totalorder %s73_s6, %s73_s6 }
  0x2a   :  { %40 = vadd.xlane.f32.xlu0 %v39_v2  ;;  %p134_p2 = scmp.ne.s32.totalorder %s73_s6, %s133_s7  ;;  %p139_p4 = scmp.lt.s32.totalorder %s133_s7, %s133_s7 }
  0x2b   :  { %v53_v14 = vcvt.s32.f32 %v51_v12  ;;  %v55_v16 = vcvt.s32.f32 %v52_v13 }
  0x2c   :  { %p140_p5 = por %p139_p4, %p138_p3 }
  0x2d   :  { %v54_v15 = vmul.f32 65536.0, %v53_v14 }
  0x2e   :  { %p141_p6 = pnand %p140_p5, %p134_p2 }
  0x2f   :  { %v56_v17 = vadd.f32 %v55_v16, %v54_v15 }
  0x31   :  { %v57_v18 = vmul.f32 5.9604645e-08, %v56_v17 }
  0xb7   :  { %v41_v3 = vpop.xlane.xlu0 %40 }
  0xb8   :  { %v42_v4 = vrot.slane %v41_v3, 4 }
  0xba   :  { %v43_v5 = vadd.f32 %v42_v4, %v41_v3 }
  0xbc   :  { %v44_v6 = vrot.slane %v43_v5, 2 }
  0xbe   :  { %v45_v7 = vadd.f32 %v44_v6, %v43_v5 }
  0xc0   :  { %v46_v8 = vrot.slane %v45_v7, 1 }
  0xc2   :  { %v47_v9 = vadd.f32 %v46_v8, %v45_v7 }
  0xc4   :  { %82 = vpush %v47_v9 }
  0xf5   :  { %s83_s1 = spop %82 }
  0xf6   :  { %v58_v19 = vstv %s83_s1 }
  0xf7   :  { %v59_v20 = vadd.f32 %v58_v19, %v57_v18 }
  0xf9   :  { %v60_v21 = vmul.f32 16.0, %v59_v20 }
  0xfb   :  { %v61_v22 = vfloor.f32 %v60_v21 }
  0xfd   :  { %v84_v23 = vtrunc.f32 %v61_v22 }
  0xff   :  { %v85_v24 = vcvt.f32.s32 %v84_v23 }
 0x101   :  { %vm63_vm1 = vcmp.lt.s32.totalorder %v85_v24, 15 }
 0x102   :  { %v64_v25 = vsel %vm63_vm1, %v85_v24, 15 }
 0x103   :  { %65 = vst [vmem:[#allocation7] sm:$0xff] %v64_v25 }
 0x104   :  { %144 = shalt.err (!%p141_p6)
}
 0x105   :  { %s145_s10 = scalar_lea.hbm %s217_s2, 128 }
 0x106   :  { %p146_p7 = scmp.ne.s32.totalorder %s217_s2, %s145_s10  ;;  %p149_p8 = scmp.lt.u32.totalorder %s145_s10, %s217_s2 }
 0x108   :  { %p151_p9 = pnand %p149_p8, %p146_p7 }
 0x10a   :  { %154 = shalt.err (!%p151_p9)
}
 0x10b   :  { %75 = dma.vmem_to_hbm [thread:$0]  %s73_s6, 128, %s217_s2, [#allocation4]  }
 0x10c   :  { %159 = dma.done.wait [#allocation4], 128  }
 0x10d   :  { %160 = vsyncadd [#allocation4], 4294967168 }
 0x10e   :  { %79 = vsyncpa [#allocation3], 1 }
 0x10f   :  { %80 = vsyncpa [#allocation6], 1 }
 0x110   :  { %81 = vsyncpa [#allocation4], 1 }

</bundles_post_ra>
